<compile_context>
chip_gen: v7x
topology: tpu7x:2x2x1
jax: 0.10.0
libtpu: 0.0.40
codegen_flags: <defaults>
</compile_context>

<pallas_src>
import jax
import jax.numpy as jnp
from jax.experimental import pallas as pl
from jax.experimental.pallas import tpu as pltpu


def _vote_kernel(feat_ref, w1_ref, bn_bias_ref, w2_ref, small_ref,
                 ctr_t_ref, lim_t_ref):
    # feat_ref: (1, C, TN) caller dtype (typically f32). Cast to bf16 in-kernel
    # (VPU work hidden under the feature DMA) so the dominant matmul takes the
    # bf16 MXU path while HBM carries the tensor exactly once.
    feat = feat_ref[0].astype(jnp.bfloat16)                       # (C, TN) bf16

    # Conv1d(k=1, no bias) with eval-mode BN scale folded into W1: bf16 operands,
    # f32 accumulation on the MXU.
    hidden = jnp.dot(w1_ref[...], feat,
                     preferred_element_type=jnp.float32)          # (H, TN) f32
    # folded eval-mode BatchNorm bias + ReLU
    hidden = jnp.maximum(hidden + bn_bias_ref[...], 0.0)

    # Conv1d(k=1, bias) -> 3 offset channels (tiny matmul, f32)
    b2 = small_ref[:, 0:1]                                        # (3, 1)
    lim = small_ref[:, 1:2]                                       # (3, 1)
    ctr = jnp.dot(w2_ref[...], hidden,
                  preferred_element_type=jnp.float32) + b2        # (3, TN)

    # limit offsets: where(ctr > max, max, ctr); where(. < -max, -max, .)
    limited = jnp.where(ctr > lim, lim, ctr)
    limited = jnp.where(limited < -lim, -lim, limited)

    ctr_t_ref[0] = ctr.astype(ctr_t_ref.dtype)                    # unclamped offsets
    lim_t_ref[0] = limited.astype(lim_t_ref.dtype)                # clamped offsets


def vote_layer_forward(xyz, features, params, tn=2048):
    """xyz: (B, N, 3), features: (B, C_in, N). Returns PyTorch-convention outputs."""
    B, N, _ = xyz.shape
    C = features.shape[1]
    H = params["w1"].shape[0]

    # Fold the eval-mode BN scale into W1 once (tiny); pack b2 + clamp limit.
    w1_folded = (params["w1"] * params["bn_scale"]).astype(jnp.bfloat16)  # (H, C)
    small = jnp.concatenate([params["b2"], params["limit"]], axis=1)      # (3, 2)

    # Tile the point dimension.  For small N the single block spans the whole
    # axis (allowed); otherwise use a 128-multiple tile and let Pallas mask the
    # partial edge block (no padding pass over HBM).
    if N <= tn:
        TN = N
    else:
        assert tn % 128 == 0, "point-dim tile must be a multiple of 128"
        TN = tn
    n_tiles = pl.cdiv(N, TN)

    batched = lambda b, n: (b, 0, n)
    resident = lambda b, n: (0, 0)

    cost = pl.CostEstimate(
        flops=2 * B * N * H * (C + 3),
        transcendentals=0,
        bytes_accessed=(features.size * features.dtype.itemsize
                        + w1_folded.size * 2 + params["w2"].size * 4
                        + params["bn_bias"].size * 4 + small.size * 4
                        + 2 * B * 3 * N * 4),
    )

    ctr_t, lim_t = pl.pallas_call(
        _vote_kernel,
        grid=(B, n_tiles),
        in_specs=[
            pl.BlockSpec((1, C, TN), batched),       # features (caller dtype)
            pl.BlockSpec((H, C), resident),          # W1 (BN scale folded, bf16)
            pl.BlockSpec((H, 1), resident),          # BN bias (f32)
            pl.BlockSpec((3, H), resident),          # W2 (f32)
            pl.BlockSpec((3, 2), resident),          # [b2 | limit] packed
        ],
        out_specs=[
            pl.BlockSpec((1, 3, TN), batched),       # unclamped offsets (chan-first)
            pl.BlockSpec((1, 3, TN), batched),       # clamped offsets   (chan-first)
        ],
        out_shape=[
            jax.ShapeDtypeStruct((B, 3, N), jnp.float32),
            jax.ShapeDtypeStruct((B, 3, N), jnp.float32),
        ],
        compiler_params=pltpu.CompilerParams(
            dimension_semantics=("parallel", "parallel")),
        cost_estimate=cost,
    )(features, w1_folded, params["bn_bias"], params["w2"], small)

    ctr_offsets = jnp.transpose(ctr_t, (0, 2, 1))                 # (B, N, 3)
    # vote = xyz + clamped offsets; the add fuses with the output transpose.
    vote_xyz = xyz + jnp.transpose(lim_t, (0, 2, 1))              # (B, N, 3)
    # ctr_offsets[..., 3:] is an empty slice in PyTorch -> empty (B, N, 0) tensor
    new_features = jnp.zeros((B, N, 0), jnp.float32)
    return vote_xyz, new_features, xyz, ctr_offsets


def make_params(key, c_in, hidden, max_translate_range):
    k1, k2, k3, k4, k5 = jax.random.split(key, 5)
    eps = 1e-5
    gamma = 1.0 + 0.1 * jax.random.normal(k3, (hidden,), jnp.float32)
    beta = 0.05 * jax.random.normal(k4, (hidden,), jnp.float32)
    running_mean = jnp.zeros((hidden,), jnp.float32)
    running_var = jnp.ones((hidden,), jnp.float32)
    scale = gamma / jnp.sqrt(running_var + eps)
    bias = beta - running_mean * scale
    return {
        "w1": 0.1 * jax.random.normal(k1, (hidden, c_in), jnp.float32),
        "bn_scale": scale.reshape(hidden, 1),
        "bn_bias": bias.reshape(hidden, 1),
        "w2": 0.1 * jax.random.normal(k2, (3, hidden), jnp.float32),
        "b2": 0.05 * jax.random.normal(k5, (3, 1), jnp.float32),
        "limit": jnp.asarray(max_translate_range, jnp.float32).reshape(3, 1),
    }


def reference_forward(xyz, features, params):
    # Pure f32 reference of the original Conv1d+BN+ReLU+Conv1d math (the kernel
    # uses bf16 operands with f32 accumulation for the first matmul, hence the
    # small tolerance in the check).
    h = jnp.einsum("hc,bcn->bhn", params["w1"], features)
    h = jnp.maximum(h * params["bn_scale"][None] + params["bn_bias"][None], 0.0)
    ctr = jnp.einsum("oh,bhn->bon", params["w2"], h) + params["b2"][None]
    ctr = jnp.transpose(ctr, (0, 2, 1))                           # (B, N, 3)
    lim = params["limit"].reshape(1, 1, 3)
    limited = jnp.where(ctr > lim, lim, ctr)
    limited = jnp.where(limited < -lim, -lim, limited)
    return xyz + limited, ctr


def _check(B, N, C_IN, HIDDEN, tn, seed):
    max_translate_range = [3.0, 3.0, 2.0]
    key = jax.random.PRNGKey(seed)
    kx, kf, kp = jax.random.split(key, 3)
    xyz = jax.random.normal(kx, (B, N, 3), jnp.float32)
    features = jax.random.normal(kf, (B, C_IN, N), jnp.float32)
    params = make_params(kp, C_IN, HIDDEN, max_translate_range)

    fwd = jax.jit(vote_layer_forward, static_argnames=("tn",))
    vote_xyz, new_features, xyz_select, ctr_offsets = jax.block_until_ready(
        fwd(xyz, features, params, tn=tn))

    ref_vote, ref_ctr = reference_forward(xyz, features, params)
    assert vote_xyz.shape == (B, N, 3)
    assert ctr_offsets.shape == (B, N, 3)
    assert new_features.shape == (B, N, 0)
    # bf16 operand rounding on the first matmul vs the true f32 reference
    assert jnp.allclose(vote_xyz, ref_vote, atol=1e-2, rtol=1e-2)
    assert jnp.allclose(ctr_offsets, ref_ctr, atol=1e-2, rtol=1e-2)
    assert jnp.array_equal(xyz_select, xyz)


if __name__ == "__main__":
    # Small case: one block spans the whole point axis.
    _check(B=2, N=16, C_IN=4, HIDDEN=32, tn=2048, seed=0)
    # Ragged case: exercises N-tiling (TN=128) with a masked partial edge block.
    _check(B=2, N=200, C_IN=4, HIDDEN=32, tn=128, seed=0)
    print("KERNEL_OK")
</pallas_src>

<mosaic_0001>
module attributes {stable_mosaic.version = 11 : i64} {
  func.func @_vote_kernel(%arg0: i32, %arg1: i32, %arg2: memref<1x4x16xf32, #tpu.memory_space<vmem>>, %arg3: memref<32x4xbf16, #tpu.memory_space<vmem>>, %arg4: memref<32x1xf32, #tpu.memory_space<vmem>>, %arg5: memref<3x32xf32, #tpu.memory_space<vmem>>, %arg6: memref<3x2xf32, #tpu.memory_space<vmem>>, %arg7: memref<1x3x16xf32, #tpu.memory_space<vmem>>, %arg8: memref<1x3x16xf32, #tpu.memory_space<vmem>>) attributes {dimension_semantics = [#tpu.dimension_semantics<parallel>, #tpu.dimension_semantics<parallel>], iteration_bounds = array<i64: 2, 1>, scalar_prefetch = 0 : i64, scratch_operands = 0 : i64, tpu.core_type = #tpu.core_type<tc>, window_params = [{transform_indices = @transform_0, window_bounds = array<i64: 1, 4, 16>}, {pipeline_mode = #tpu.pipeline_mode<synchronous>, transform_indices = @transform_1, window_bounds = array<i64: 32, 4>}, {pipeline_mode = #tpu.pipeline_mode<synchronous>, transform_indices = @transform_2, window_bounds = array<i64: 32, 1>}, {pipeline_mode = #tpu.pipeline_mode<synchronous>, transform_indices = @transform_3, window_bounds = array<i64: 3, 32>}, {pipeline_mode = #tpu.pipeline_mode<synchronous>, transform_indices = @transform_4, window_bounds = array<i64: 3, 2>}, {transform_indices = @transform_5, window_bounds = array<i64: 1, 3, 16>}, {transform_indices = @transform_6, window_bounds = array<i64: 1, 3, 16>}]} {
    %c0 = arith.constant 0 : index
    %c0_0 = arith.constant 0 : index
    %c0_1 = arith.constant 0 : index
    %0 = vector.load %arg2[%c0, %c0_0, %c0_1] : memref<1x4x16xf32, #tpu.memory_space<vmem>>, vector<1x4x16xf32>
    %1 = vector.shape_cast %0 : vector<1x4x16xf32> to vector<4x16xf32>
    %2 = arith.truncf %1 : vector<4x16xf32> to vector<4x16xbf16>
    %c0_2 = arith.constant 0 : index
    %c0_3 = arith.constant 0 : index
    %3 = vector.load %arg3[%c0_2, %c0_3] : memref<32x4xbf16, #tpu.memory_space<vmem>>, vector<32x4xbf16>
    %cst = arith.constant dense<0.000000e+00> : vector<32x16xf32>
    %4 = tpu.matmul %3, %2, %cst {dimension_numbers = #tpu.dot_dimension_numbers<[1], [0], [0], [1], [0, 0, 1, 1], [], []>} : vector<32x4xbf16>, vector<4x16xbf16>, vector<32x16xf32> -> vector<32x16xf32>
    %c0_4 = arith.constant 0 : index
    %c0_5 = arith.constant 0 : index
    %5 = vector.load %arg4[%c0_4, %c0_5] : memref<32x1xf32, #tpu.memory_space<vmem>>, vector<32x1xf32>
    %6 = vector.broadcast %5 : vector<32x1xf32> to vector<32x16xf32>
    %7 = arith.addf %4, %6 : vector<32x16xf32>
    %cst_6 = arith.constant 0.000000e+00 : f32
    %8 = vector.broadcast %cst_6 : f32 to vector<32x16xf32>
    %9 = arith.maximumf %7, %8 : vector<32x16xf32>
    %c0_7 = arith.constant 0 : index
    %c0_8 = arith.constant 0 : index
    %10 = vector.load %arg6[%c0_7, %c0_8] : memref<3x2xf32, #tpu.memory_space<vmem>>, vector<3x1xf32>
    %c0_9 = arith.constant 0 : index
    %c1 = arith.constant 1 : index
    %11 = vector.load %arg6[%c0_9, %c1] : memref<3x2xf32, #tpu.memory_space<vmem>>, vector<3x1xf32>
    %c0_10 = arith.constant 0 : index
    %c0_11 = arith.constant 0 : index
    %12 = vector.load %arg5[%c0_10, %c0_11] : memref<3x32xf32, #tpu.memory_space<vmem>>, vector<3x32xf32>
    %cst_12 = arith.constant dense<0.000000e+00> : vector<3x16xf32>
    %13 = tpu.matmul %12, %9, %cst_12 {dimension_numbers = #tpu.dot_dimension_numbers<[1], [0], [0], [1], [0, 0, 1, 1], [], []>} : vector<3x32xf32>, vector<32x16xf32>, vector<3x16xf32> -> vector<3x16xf32>
    %14 = vector.broadcast %10 : vector<3x1xf32> to vector<3x16xf32>
    %15 = arith.addf %13, %14 : vector<3x16xf32>
    %16 = vector.broadcast %11 : vector<3x1xf32> to vector<3x16xf32>
    %17 = arith.cmpf ogt, %15, %16 : vector<3x16xf32>
    %18 = vector.shape_cast %11 : vector<3x1xf32> to vector<3x1xf32>
    %19 = vector.broadcast %18 : vector<3x1xf32> to vector<3x16xf32>
    %20 = arith.select %17, %19, %15 : vector<3x16xi1>, vector<3x16xf32>
    %cst_13 = arith.constant 0.000000e+00 : f32
    %21 = vector.broadcast %cst_13 : f32 to vector<3x1xf32>
    %22 = arith.subf %21, %11 : vector<3x1xf32>
    %23 = vector.broadcast %22 : vector<3x1xf32> to vector<3x16xf32>
    %24 = arith.cmpf olt, %20, %23 : vector<3x16xf32>
    %cst_14 = arith.constant 0.000000e+00 : f32
    %25 = vector.broadcast %cst_14 : f32 to vector<3x1xf32>
    %26 = arith.subf %25, %11 : vector<3x1xf32>
    %27 = vector.shape_cast %26 : vector<3x1xf32> to vector<3x1xf32>
    %28 = vector.broadcast %27 : vector<3x1xf32> to vector<3x16xf32>
    %29 = arith.select %24, %28, %20 : vector<3x16xi1>, vector<3x16xf32>
    %c0_15 = arith.constant 0 : index
    %c0_16 = arith.constant 0 : index
    %c0_17 = arith.constant 0 : index
    %30 = vector.load %arg7[%c0_15, %c0_16, %c0_17] : memref<1x3x16xf32, #tpu.memory_space<vmem>>, vector<1x3x16xf32>
    %31 = vector.shape_cast %30 : vector<1x3x16xf32> to vector<3x16xf32>
    %32 = vector.shape_cast %15 : vector<3x16xf32> to vector<1x3x16xf32>
    tpu.vector_store %arg7[%c0_15, %c0_16, %c0_17], %32 {strides = array<i32>} : memref<1x3x16xf32, #tpu.memory_space<vmem>>, vector<1x3x16xf32>,
    %c0_18 = arith.constant 0 : index
    %c0_19 = arith.constant 0 : index
    %c0_20 = arith.constant 0 : index
    %33 = vector.load %arg8[%c0_18, %c0_19, %c0_20] : memref<1x3x16xf32, #tpu.memory_space<vmem>>, vector<1x3x16xf32>
    %34 = vector.shape_cast %33 : vector<1x3x16xf32> to vector<3x16xf32>
    %35 = vector.shape_cast %29 : vector<3x16xf32> to vector<1x3x16xf32>
    tpu.vector_store %arg8[%c0_18, %c0_19, %c0_20], %35 {strides = array<i32>} : memref<1x3x16xf32, #tpu.memory_space<vmem>>, vector<1x3x16xf32>,
    return
  }
  func.func @transform_0(%arg0: i32, %arg1: i32) -> (i32, i32, i32) {
    %c0_i32 = arith.constant 0 : i32
    %c0_i32_0 = arith.constant 0 : i32
    return %arg0, %c0_i32, %arg1 : i32, i32, i32
  }
  func.func @transform_1(%arg0: i32, %arg1: i32) -> (i32, i32) {
    %c0_i32 = arith.constant 0 : i32
    %c0_i32_0 = arith.constant 0 : i32
    %c0_i32_1 = arith.constant 0 : i32
    return %c0_i32, %c0_i32_0 : i32, i32
  }
  func.func @transform_2(%arg0: i32, %arg1: i32) -> (i32, i32) {
    %c0_i32 = arith.constant 0 : i32
    %c0_i32_0 = arith.constant 0 : i32
    %c0_i32_1 = arith.constant 0 : i32
    return %c0_i32, %c0_i32_0 : i32, i32
  }
  func.func @transform_3(%arg0: i32, %arg1: i32) -> (i32, i32) {
    %c0_i32 = arith.constant 0 : i32
    %c0_i32_0 = arith.constant 0 : i32
    %c0_i32_1 = arith.constant 0 : i32
    return %c0_i32, %c0_i32_0 : i32, i32
  }
  func.func @transform_4(%arg0: i32, %arg1: i32) -> (i32, i32) {
    %c0_i32 = arith.constant 0 : i32
    %c0_i32_0 = arith.constant 0 : i32
    %c0_i32_1 = arith.constant 0 : i32
    return %c0_i32, %c0_i32_0 : i32, i32
  }
  func.func @transform_5(%arg0: i32, %arg1: i32) -> (i32, i32, i32) {
    %c0_i32 = arith.constant 0 : i32
    %c0_i32_0 = arith.constant 0 : i32
    return %arg0, %c0_i32, %arg1 : i32, i32, i32
  }
  func.func @transform_6(%arg0: i32, %arg1: i32) -> (i32, i32, i32) {
    %c0_i32 = arith.constant 0 : i32
    %c0_i32_0 = arith.constant 0 : i32
    return %arg0, %c0_i32, %arg1 : i32, i32, i32
  }
}

</mosaic_0001>

<bundles_post_ra>
// kernel: vote_layer_forward.1
= control target key start
LH: loop header
LB: loop body
LE: loop exit
PB: predicated region body
PF: predicated region fallthrough
CT: control target
= control target key end

     0   :  { %s761_s21 = smov 0   ;;  %s763_s22 = smov 0   ;;  %s828_s0 = inlined_call_operand.vmem [shape: f32[2,4,16], index: 0, kind: input, shape index: {}]   ;;  %s829_s1 = inlined_call_operand.vmem [shape: bf16[32,4], index: 1, kind: input, shape index: {}]   ;;  %s830_s2 = inlined_call_operand.vmem [shape: f32[32,1], index: 2, kind: input, shape index: {}]   ;;  %s831_s3 = inlined_call_operand.vmem [shape: f32[3,32], index: 3, kind: input, shape index: {}]   ;;  %s832_s4 = inlined_call_operand.vmem [shape: f32[3,2], index: 4, kind: input, shape index: {}]   ;;  %s833_s5 = inlined_call_operand.vmem [shape: f32[2,3,16], index: 5, kind: output, shape index: {0}]   ;;  %s834_s6 = inlined_call_operand.vmem [shape: f32[2,3,16], index: 6, kind: output, shape index: {1}]  }
   0x1   :  { %s765_s23 = smov 0  }
   0x2 LB: > { %s29_s24 = sadd.s32 1, %s715_s22  ;;  %p619_p0 = scmp.ge.s32.totalorder %s719_s23, 1  ;;  %s719_s23 = sphi %s765_s23, %s17_s23   ;;  %s715_s22 = sphi %s763_s22, %s836_s22   ;;  %s711_s21 = sphi %s761_s21, %s835_s21  }
   0x3   : > { %p31_p1 = scmp.ge.s32.totalorder %s29_s24, 2  ;;  %p235_p2 = scmp.lt.s32.totalorder %s719_s23, 3 }
   0x5   : > { %s838_s24 = smov (%p31_p1, %s29_s24), 0  ;;  %p236_p3 = pnand %p619_p0, %p235_p2 }
   0x6   : > { %p276_p4 = scmp.lt.s32.totalorder (!%p236_p3), %s711_s21, 1  ;;  %v695_v0 = vld [vmem:[%s829_s1] sm:$0xff] (!%p236_p3)   ;;  %vm338_vm0 = vcmask (!%p236_p3), 31744   ;;  %v721_v2 = vmov (!%p236_p3), 0   ;;  %v306_v3 = vld [vmem:[%s830_s2 + $0x10] sm:$0xff] (!%p236_p3)  ;;  %v305_v4 = vld [vmem:[%s830_s2 + $0x8] sm:$0xff] (!%p236_p3) }
   0x7   : > { %239 = sbr.rel (%p236_p3) target bundleno = 471 (0x1d7), region = 40  ;;  %v304_v1 = vld [vmem:[%s830_s2] sm:$0xff] (!%p236_p3)  ;;  %640 = vmatprep.mubr.msk.bf16.mxu0 (!%p236_p3), %vm338_vm0, %v695_v0  ;;  %691 = vset.pattern.permute.xlu0 (!%p236_p3), %v721_v2  ;;  %vm345_vm1 = vcmask (!%p236_p3), 1041408   ;;  %v307_v6 = vld [vmem:[%s830_s2 + $0x18] sm:$0xff] (!%p236_p3)  ;;  %v696_v9 = vld [vmem:[%s829_s1 + $0x8] sm:$0xff] (!%p236_p3)   ;;  %v722_v11 = vmov (!%p236_p3), 0.0|0.0  }
   0x8   : > { %310 = vperm.xlu0 (!%p236_p3), %691, %v304_v1   ;;  %692 = vset.pattern.permute.xlu1 (!%p236_p3), %v721_v2  ;;  %v402_v10 = vld [vmem:[%s832_s4] sm:$0x7] (!%p236_p3)  ;;  %vm723_vm2 = vmmov (!%p236_p3), 0   ;;  %v724_v12 = vmov (!%p236_p3), 0.0   ;;  %v725_v14 = vmov (!%p236_p3), 1   ;;  %vm409_vm3 = vcmask (!%p236_p3), 261120  }
   0x9   : > { %320 = vperm.xlu1 (!%p236_p3), %692, %v306_v3   ;;  %655 = vmatprep.subr.bf16.mxu1 (!%p236_p3), %v722_v11  ;;  %v489_v13 = vsub.f32 (!%p236_p3), 0.0, %v402_v10  ;;  %v403_v33 = vld [vmem:[%s831_s3] sm:$0x7] (!%p236_p3)  ;;  %vm497_vm4 = vcmask (!%p236_p3), 124928  }
   0xa   : > { %652 = vmatprep.mubr.msk.f32.mxu1 (!%p236_p3), %vm723_vm2, %v724_v12 }
   0xc   : > { %315 = vperm.xlu0 (!%p236_p3), %691, %v305_v4  }
   0xd   : > { %325 = vperm.xlu1 (!%p236_p3), %692, %v307_v6  }
   0xe   : > { %s840_s21 = smov (!%p276_p4, %s711_s21), 1 }
   0xf   : > { %s789_s7 = sshll.u32 %s840_s21, 2 }
  0x10   : > { %s282_s10 = scalar_lea.vmem %s828_s0, %s789_s7  ;;  %406 = vperm.xlu0 %691, %v402_v10   ;;  %s289_s26 = scalar_lea.vmem %s833_s5, %s789_s7 }
  0x11   : > { %v298_v5 = vld [vmem:[%s282_s10] sm:$0xf]  ;;  %693 = vset.pattern.permute.xlu1 %v725_v14  ;;  %s296_s29 = scalar_lea.vmem %s834_s6, %s789_s7 }
  0x12   : > { %v299_v7 = vpack.c.bf16 %v298_v5, %v298_v5  ;;  %484 = vperm.xlu1 %693, %v402_v10  }
  0x14   : > { %661 = vmatprep.subr.msk.bf16.mxu0 %vm345_vm1, %v299_v7  ;;  %v347_v8 = vsel %vm345_vm1, %v299_v7, 0  ;;  %694 = vset.pattern.permute.xlu0 %v725_v14 }
  0x15   : > { %639 = vmatpush3.bf16.msra.mxu0 %v347_v8  ;;  %492 = vperm.xlu0 %694, %v489_v13  }
  0x18   : > { %641 = vmatmul.mubr.msk.bf16.vlgmr.msra.gmra.mrb[0].mxu0 %vm338_vm0, %v696_v9 }
  0x87   : > { %v311_v16 = vpop.permute.xlu0 %310 }
  0x88   : > { %v321_v15 = vpop.permute.xlu1 %320 }
  0x8b   : > { %v316_v23 = vpop.permute.xlu0 %315 }
  0x8c   : > { %v326_v18 = vpop.permute.xlu1 %325 }
  0x8f   : > { %v407_v34 = vpop.permute.xlu0 %406 }
  0x91   : > { %v485_v36 = vpop.permute.xlu1 %484 }
  0x94   : > { %v493_v39 = vpop.permute.xlu0 %492 }
  0xeb   : > { %v642_v17 = vpop.f32.mrb[0].mxu0 }
  0xec   : > { %v392_v19 = vadd.f32 %v642_v17, %v321_v15  ;;  %v383_v20 = vpop.f32.mrb[1].mxu0 }
  0xed   : > { %v384_v21 = vadd.f32 %v383_v20, %v311_v16  ;;  %v643_v22 = vpop.f32.mrb[2].mxu0 }
  0xee   : > { %v395_v24 = vadd.f32 %v643_v22, %v326_v18  ;;  %v386_v25 = vpop.f32.mrb[3].mxu0  ;;  %v400_v27 = vmax.f32 %v392_v19, 0.0 }
  0xef   : > { %v387_v26 = vadd.f32 %v386_v25, %v316_v23  ;;  %v398_v29 = vmax.f32 %v384_v21, 0.0 }
  0xf0   : > { %v401_v28 = vmax.f32 %v395_v24, 0.0 }
  0xf1   : > { %v399_v30 = vmax.f32 %v387_v26, 0.0 }
  0xf2   : > { %v659_v31 = vpack.c.bf16 %v401_v28, %v400_v27 }
  0xf3   : > { %v656_v32 = vpack.c.bf16 %v399_v30, %v398_v29 }
  0xf5   : > { %657 = vmatpush3.bf16.msra.mxu1 %v656_v32 }
  0xf6   : > { %658 = vmatprep.subr.bf16.mxu1 %v722_v11 }
  0xf9   : > { %660 = vmatpush3.bf16.msra.mxu1 %v659_v31 }
  0xfc   : > { %653 = vmatmul.mubr.msk.f32.vlgmr.msra.gmra.mrb[0].mxu1 %vm409_vm3, %v403_v33 }
 0x1cf   : > { %v479_v35 = vpop.f32.mrb[0].mxu1 }
 0x1d0   : > { %v480_v37 = vadd.f32 %v479_v35, %v407_v34  ;;  %v654_v38 = vpop.f32.mrb[1].mxu1 }
 0x1d2   : > { %498 = vst.msk [vmem:[%s289_s26] sm:$0x7] %vm497_vm4, %v480_v37  ;;  %vm487_vm5 = vcmp.gt.f32.partialorder %v480_v37, %v485_v36 }
 0x1d3   : > { %v488_v40 = vsel %vm487_vm5, %v485_v36, %v480_v37 }
 0x1d4   : > { %vm495_vm6 = vcmp.lt.f32.partialorder %v488_v40, %v493_v39 }
 0x1d5   : > { %v496_v41 = vsel %vm495_vm6, %v493_v39, %v488_v40 }
 0x1d6   : > { %499 = vst.msk [vmem:[%s296_s29] sm:$0x7] %vm497_vm4, %v496_v41 }
 0x1d7 PF: > { %s17_s23 = sadd.s32 1, %s719_s23   ;;  %s835_s21 = smov %s715_s22 }
 0x1d8   : > { %p14_p5 = scmp.ge.s32.totalorder %s17_s23, 4   ;;  %s836_s22 = smov %s838_s24 }
 0x1da   :  { %16 = sbr.rel (!%p14_p5) target bundleno = 2 (0x2), region = 82 }

</bundles_post_ra>
